<compile_context>
chip_gen: v6e
topology: v6e:2x2x1
jax: 0.10.0
libtpu: 0.0.40
codegen_flags: <defaults>
</compile_context>

<pallas_src>
from functools import partial
from typing import NamedTuple

import jax
import jax.numpy as jnp
from jax.experimental import pallas as pl
from jax.experimental.pallas import tpu as pltpu


_LANES = 1024                      # lane-dense last dim (multiple of 128)
_TARGET_BLOCK_BYTES = 2 << 20      # ~2 MiB per operand per block


def _cdiv(a, b):
    return -(-a // b)


def _round_up(x, m):
    return _cdiv(x, m) * m


class _Plan(NamedTuple):
    lane_width: int
    rows: int
    sublane: int
    rows_per_block: int
    padded_rows: int
    grid_rows: int
    padded_n: int


def _plan(n, itemsize, lane_width=_LANES, target_block_bytes=_TARGET_BLOCK_BYTES):
    """Static tiling plan for a flat array of n elements of `itemsize` bytes."""
    L = lane_width
    rows = _cdiv(n, L)
    # Native sublane tile depends on dtype width: 8 (f32), 16 (bf16), 32 (int8).
    sublane = max(8, 32 // int(itemsize))
    # ~target_block_bytes per operand, multiple of the sublane tile.
    max_rows = max(sublane,
                   (target_block_bytes // (L * itemsize)) // sublane * sublane)
    # Cap so the grid has >= 4 steps (>= 2 pipelined steps per v7x TensorCore).
    quarter_rows = _round_up(_cdiv(rows, 4), sublane)
    rows_per_block = max(sublane, min(max_rows, quarter_rows))
    padded_rows = _round_up(rows, rows_per_block)
    grid_rows = padded_rows // rows_per_block
    return _Plan(L, rows, sublane, rows_per_block, padded_rows, grid_rows,
                 padded_rows * L)


def _sampler_kernel(mu_ref, logvar_ref, eps_ref, out_ref):
    # Fused elementwise hot path in f32 (bf16 inputs are upcast on load).
    mu = mu_ref[...].astype(jnp.float32)
    logvar = logvar_ref[...].astype(jnp.float32)
    eps = eps_ref[...].astype(jnp.float32)
    std = jnp.exp(0.5 * logvar)
    out_ref[...] = (eps * std + mu).astype(out_ref.dtype)


@partial(jax.jit, static_argnames=("lane_width", "target_block_bytes"))
def sampler(mu, logvar, key, *, lane_width=_LANES,
            target_block_bytes=_TARGET_BLOCK_BYTES):
    """Reparameterization sample: eps * exp(0.5*logvar) + mu, eps ~ N(0,1)."""
    assert mu.shape == logvar.shape, (mu.shape, logvar.shape)
    orig_shape = mu.shape
    dtype = mu.dtype
    itemsize = jnp.dtype(dtype).itemsize

    n = 1
    for s in orig_shape:
        n *= int(s)

    p = _plan(n, itemsize, lane_width, target_block_bytes)

    mu_flat = mu.reshape(-1)
    lv_flat = logvar.reshape(-1)
    if p.padded_n != n:
        pad = p.padded_n - n
        # Zero padding is safe: exp(0)=1, finite everywhere; the tail is dropped.
        mu_flat = jnp.pad(mu_flat, (0, pad))
        lv_flat = jnp.pad(lv_flat, (0, pad))
    mu2 = mu_flat.reshape(p.padded_rows, p.lane_width)
    lv2 = lv_flat.reshape(p.padded_rows, p.lane_width)

    # eps is drawn directly at the padded lane-dense shape (matches torch's
    # float32 eps regardless of mu/logvar dtype); no extra pad pass needed.
    eps2 = jax.random.normal(key, (p.padded_rows, p.lane_width),
                             dtype=jnp.float32)

    spec = pl.BlockSpec((p.rows_per_block, p.lane_width), lambda i: (i, 0))

    out2 = pl.pallas_call(
        _sampler_kernel,
        out_shape=jax.ShapeDtypeStruct((p.padded_rows, p.lane_width), dtype),
        grid=(p.grid_rows,),
        in_specs=[spec, spec, spec],
        out_specs=spec,
        compiler_params=pltpu.CompilerParams(
            dimension_semantics=("parallel",),
            vmem_limit_bytes=48 * 1024 * 1024,
        ),
    )(mu2, lv2, eps2)

    out_flat = out2.reshape(-1)
    if p.padded_n != n:
        out_flat = out_flat[:n]
    return out_flat.reshape(orig_shape)


def sampler_from_pair(inputs, key):
    """Mirror of the PyTorch forward(input) where input[0]=mu, input[1]=logvar."""
    return sampler(inputs[0], inputs[1], key)


if __name__ == "__main__":
    key = jax.random.PRNGKey(0)
    k_mu, k_lv, k_eps = jax.random.split(key, 3)

    # Small NCHW shapes consistent with a DCGAN-VAE latent feature map.
    B, C, H, W = 2, 4, 16, 16
    mu = jax.random.normal(k_mu, (B, C, H, W), dtype=jnp.float32)
    logvar = jax.random.normal(k_lv, (B, C, H, W), dtype=jnp.float32)

    out = jax.block_until_ready(sampler_from_pair((mu, logvar), k_eps))
    assert out.shape == (B, C, H, W)
    assert bool(jnp.isfinite(out).all())

    # Exact reference: replicate the wrapper's eps draw (same key, same padded
    # lane-dense shape), then compute eps * exp(0.5*logvar) + mu in pure JAX.
    n = B * C * H * W
    p = _plan(n, jnp.dtype(jnp.float32).itemsize)
    eps_full = jax.random.normal(k_eps, (p.padded_rows, p.lane_width),
                                 dtype=jnp.float32)
    eps = eps_full.reshape(-1)[:n].reshape(B, C, H, W)
    ref = eps * jnp.exp(0.5 * logvar) + mu
    assert bool(jnp.allclose(out, ref, atol=1e-5, rtol=1e-5)), "mismatch vs reference"

    # eps should look standard-normal (loose statistical sanity check, n=2048).
    m = float(jnp.mean(eps))
    s = float(jnp.std(eps))
    assert abs(m) < 0.15, f"eps mean off: {m}"
    assert 0.8 < s < 1.2, f"eps std off: {s}"

    # Determinism: same key + same inputs -> identical output.
    out_again = jax.block_until_ready(sampler(mu, logvar, k_eps))
    assert bool(jnp.array_equal(out, out_again))

    # Different key -> different noise.
    out_other = jax.block_until_ready(sampler(mu, logvar, jax.random.PRNGKey(123)))
    assert not bool(jnp.allclose(out, out_other))

    print("KERNEL_OK")
</pallas_src>

<mosaic_0001>
module attributes {stable_mosaic.version = 11 : i64} {
  func.func @_sampler_kernel(%arg0: i32, %arg1: memref<8x1024xf32, #tpu.memory_space<vmem>>, %arg2: memref<8x1024xf32, #tpu.memory_space<vmem>>, %arg3: memref<8x1024xf32, #tpu.memory_space<vmem>>, %arg4: memref<8x1024xf32, #tpu.memory_space<vmem>>) attributes {dimension_semantics = [#tpu.dimension_semantics<parallel>], iteration_bounds = array<i64: 1>, scalar_prefetch = 0 : i64, scratch_operands = 0 : i64, tpu.core_type = #tpu.core_type<tc>, window_params = [{transform_indices = @transform_0, window_bounds = array<i64: 8, 1024>}, {transform_indices = @transform_1, window_bounds = array<i64: 8, 1024>}, {transform_indices = @transform_2, window_bounds = array<i64: 8, 1024>}, {transform_indices = @transform_3, window_bounds = array<i64: 8, 1024>}]} {
    %c0 = arith.constant 0 : index
    %c0_0 = arith.constant 0 : index
    %0 = vector.load %arg1[%c0, %c0_0] : memref<8x1024xf32, #tpu.memory_space<vmem>>, vector<8x1024xf32>
    %c0_1 = arith.constant 0 : index
    %c0_2 = arith.constant 0 : index
    %1 = vector.load %arg2[%c0_1, %c0_2] : memref<8x1024xf32, #tpu.memory_space<vmem>>, vector<8x1024xf32>
    %c0_3 = arith.constant 0 : index
    %c0_4 = arith.constant 0 : index
    %2 = vector.load %arg3[%c0_3, %c0_4] : memref<8x1024xf32, #tpu.memory_space<vmem>>, vector<8x1024xf32>
    %cst = arith.constant 5.000000e-01 : f32
    %3 = vector.broadcast %cst : f32 to vector<8x1024xf32>
    %4 = arith.mulf %3, %1 : vector<8x1024xf32>
    %5 = math.exp %4 : vector<8x1024xf32>
    %6 = arith.mulf %2, %5 : vector<8x1024xf32>
    %7 = arith.addf %6, %0 : vector<8x1024xf32>
    %c0_5 = arith.constant 0 : index
    %c0_6 = arith.constant 0 : index
    %8 = vector.load %arg4[%c0_5, %c0_6] : memref<8x1024xf32, #tpu.memory_space<vmem>>, vector<8x1024xf32>
    tpu.vector_store %arg4[%c0_5, %c0_6], %7 {strides = array<i32>} : memref<8x1024xf32, #tpu.memory_space<vmem>>, vector<8x1024xf32>,
    return
  }
  func.func @transform_0(%arg0: i32) -> (i32, i32) {
    %c0_i32 = arith.constant 0 : i32
    %c0_i32_0 = arith.constant 0 : i32
    return %arg0, %c0_i32 : i32, i32
  }
  func.func @transform_1(%arg0: i32) -> (i32, i32) {
    %c0_i32 = arith.constant 0 : i32
    %c0_i32_0 = arith.constant 0 : i32
    return %arg0, %c0_i32 : i32, i32
  }
  func.func @transform_2(%arg0: i32) -> (i32, i32) {
    %c0_i32 = arith.constant 0 : i32
    %c0_i32_0 = arith.constant 0 : i32
    return %arg0, %c0_i32 : i32, i32
  }
  func.func @transform_3(%arg0: i32) -> (i32, i32) {
    %c0_i32 = arith.constant 0 : i32
    %c0_i32_0 = arith.constant 0 : i32
    return %arg0, %c0_i32 : i32, i32
  }
}

</mosaic_0001>

<bundles_post_ra>
// kernel: sampler.1
= control target key start
LH: loop header
LB: loop body
LE: loop exit
PB: predicated region body
PF: predicated region fallthrough
CT: control target
= control target key end

     0   :  { %s222_s1 = inlined_call_operand.vmem [shape: f32[8,1024], index: 1, kind: input, shape index: {}]   ;;  %s223_s2 = inlined_call_operand.vmem [shape: f32[8,1024], index: 2, kind: input, shape index: {}]   ;;  %s224_s0 = inlined_call_operand.vmem [shape: f32[8,1024], index: 0, kind: input, shape index: {}]   ;;  %s225_s3 = inlined_call_operand.vmem [shape: f32[8,1024], index: 3, kind: output, shape index: {}]  }
   0x1   :  { %v22_v0 = vld [vmem:[%s222_s1] sm:$0xff]  ;;  %v23_v2 = vld [vmem:[%s222_s1 + $0x8] sm:$0xff]  ;;  %v24_v4 = vld [vmem:[%s222_s1 + $0x10] sm:$0xff] }
   0x2   :  { %v38_v1 = vmul.f32 0.5, %v22_v0  ;;  %v39_v3 = vmul.f32 0.5, %v23_v2  ;;  %v40_v6 = vmul.f32 0.5, %v24_v4  ;;  %v25_v7 = vld [vmem:[%s222_s1 + $0x18] sm:$0xff]  ;;  %v26_v10 = vld [vmem:[%s222_s1 + $0x20] sm:$0xff]  ;;  %v27_v13 = vld [vmem:[%s222_s1 + $0x28] sm:$0xff] }
   0x3   :  { %v41_v9 = vmul.f32 0.5, %v25_v7  ;;  %v42_v12 = vmul.f32 0.5, %v26_v10  ;;  %v43_v15 = vmul.f32 0.5, %v27_v13  ;;  %v28_v16 = vld [vmem:[%s222_s1 + $0x30] sm:$0xff]  ;;  %v29_v19 = vld [vmem:[%s222_s1 + $0x38] sm:$0xff]  ;;  %v30_v24 = vld [vmem:[%s223_s2] sm:$0xff] }
   0x4   :  { %v46_v5 = vmul.f32 1.442695, %v38_v1  ;;  %v48_v8 = vmul.f32 1.442695, %v39_v3  ;;  %v50_v11 = vmul.f32 1.442695, %v40_v6 }
   0x5   :  { %v52_v14 = vmul.f32 1.442695, %v41_v9  ;;  %v54_v17 = vmul.f32 1.442695, %v42_v12  ;;  %v44_v18 = vmul.f32 0.5, %v28_v16  ;;  %v45_v21 = vmul.f32 0.5, %v29_v19 }
   0x6   :  { %90 = vpow2.f32 %v46_v5  ;;  %v56_v20 = vmul.f32 1.442695, %v43_v15  ;;  %v31_v25 = vld [vmem:[%s223_s2 + $0x8] sm:$0xff]  ;;  %v14_v27 = vld [vmem:[%s224_s0] sm:$0xff]  ;;  %v32_v28 = vld [vmem:[%s223_s2 + $0x10] sm:$0xff] }
   0x7   :  { %92 = vpow2.f32 %v48_v8  ;;  %v58_v22 = vmul.f32 1.442695, %v44_v18  ;;  %v60_v23 = vmul.f32 1.442695, %v45_v21  ;;  %v15_v31 = vld [vmem:[%s224_s0 + $0x8] sm:$0xff]  ;;  %v33_v32 = vld [vmem:[%s223_s2 + $0x18] sm:$0xff] }
   0x8   :  { %94 = vpow2.f32 %v50_v11  ;;  %v16_v35 = vld [vmem:[%s224_s0 + $0x10] sm:$0xff]  ;;  %v34_v36 = vld [vmem:[%s223_s2 + $0x20] sm:$0xff]  ;;  %v17_v40 = vld [vmem:[%s224_s0 + $0x18] sm:$0xff] }
   0x9   :  { %96 = vpow2.f32 %v52_v14  ;;  %v35_v41 = vld [vmem:[%s223_s2 + $0x28] sm:$0xff]  ;;  %v18_v45 = vld [vmem:[%s224_s0 + $0x20] sm:$0xff]  ;;  %v36_v46 = vld [vmem:[%s223_s2 + $0x30] sm:$0xff] }
   0xa   :  { %98 = vpow2.f32 %v54_v17  ;;  %v19_v50 = vld [vmem:[%s224_s0 + $0x28] sm:$0xff]  ;;  %v37_v51 = vld [vmem:[%s223_s2 + $0x38] sm:$0xff]  ;;  %v20_v55 = vld [vmem:[%s224_s0 + $0x30] sm:$0xff] }
   0xb   :  { %100 = vpow2.f32 %v56_v20  ;;  %v21_v59 = vld [vmem:[%s224_s0 + $0x38] sm:$0xff] }
   0xc   :  { %102 = vpow2.f32 %v58_v22 }
   0xd   :  { %104 = vpow2.f32 %v60_v23 }
  0x13   :  { %v91_v26 = vpop.eup %90 }
  0x14   :  { %v93_v29 = vpop.eup %92  ;;  %v62_v30 = vmul.f32 %v91_v26, %v30_v24 }
  0x15   :  { %v95_v33 = vpop.eup %94  ;;  %v63_v34 = vmul.f32 %v93_v29, %v31_v25 }
  0x16   :  { %v97_v37 = vpop.eup %96  ;;  %v70_v38 = vadd.f32 %v62_v30, %v14_v27  ;;  %v64_v39 = vmul.f32 %v95_v33, %v32_v28 }
  0x17   :  { %v99_v42 = vpop.eup %98  ;;  %v71_v43 = vadd.f32 %v63_v34, %v15_v31  ;;  %v65_v44 = vmul.f32 %v97_v37, %v33_v32 }
  0x18   :  { %v101_v47 = vpop.eup %100  ;;  %78 = vst [vmem:[%s225_s3] sm:$0xff] %v70_v38  ;;  %v72_v48 = vadd.f32 %v64_v39, %v16_v35  ;;  %v66_v49 = vmul.f32 %v99_v42, %v34_v36 }
  0x19   :  { %v103_v52 = vpop.eup %102  ;;  %79 = vst [vmem:[%s225_s3 + $0x8] sm:$0xff] %v71_v43  ;;  %v73_v53 = vadd.f32 %v65_v44, %v17_v40  ;;  %v67_v54 = vmul.f32 %v101_v47, %v35_v41 }
  0x1a   :  { %v105_v56 = vpop.eup %104  ;;  %80 = vst [vmem:[%s225_s3 + $0x10] sm:$0xff] %v72_v48  ;;  %v74_v57 = vadd.f32 %v66_v49, %v18_v45  ;;  %v68_v58 = vmul.f32 %v103_v52, %v36_v46 }
  0x1b   :  { %81 = vst [vmem:[%s225_s3 + $0x18] sm:$0xff] %v73_v53  ;;  %v75_v60 = vadd.f32 %v67_v54, %v19_v50  ;;  %v69_v61 = vmul.f32 %v105_v56, %v37_v51 }
  0x1c   :  { %82 = vst [vmem:[%s225_s3 + $0x20] sm:$0xff] %v74_v57  ;;  %v76_v62 = vadd.f32 %v68_v58, %v20_v55 }
  0x1d   :  { %83 = vst [vmem:[%s225_s3 + $0x28] sm:$0xff] %v75_v60  ;;  %v77_v63 = vadd.f32 %v69_v61, %v21_v59 }
  0x1e   :  { %84 = vst [vmem:[%s225_s3 + $0x30] sm:$0xff] %v76_v62 }
  0x1f   :  { %85 = vst [vmem:[%s225_s3 + $0x38] sm:$0xff] %v77_v63 }

</bundles_post_ra>
